<compile_context>
chip_gen: v5e
topology: v5e:2x2
jax: 0.10.0
libtpu: 0.0.40
codegen_flags: <defaults>
</compile_context>

<pallas_src>
import functools

import jax
import jax.numpy as jnp
from jax.experimental import pallas as pl
from jax.experimental.pallas import tpu as pltpu

_LANE = 128
_MiB = 1 << 20
_GELU_APPROX = True  # tanh-approx GELU (EUP); set False-path via lax.erf if exact parity needed


def _round_up(x: int, m: int) -> int:
    return ((x + m - 1) // m) * m


# ----------------------------------------------------------------------------
# Fused kernel: all Linear layers + activations in one body, h never leaves
# VMEM/vregs between layers.
# ----------------------------------------------------------------------------
def _mlp_fused_kernel(*refs, num_layers: int, activation: str, compute_dtype):
    """refs = (x_ref, w1, b1, ..., wL, bL, o_ref)

    x_ref : (tm, K0)   input rows tile (K0 = true input_dim, unpadded)
    wi    : (Ki, Nip)  pre-transposed weight, N padded to 128, compute_dtype
    bi    : (1,  Nip)  bias, float32
    o_ref : (tm, NLp)  output rows tile (NLp = output_dim padded to 128)
    """
    x_ref = refs[0]
    o_ref = refs[-1]
    p = refs[1:-1]

    h = x_ref[...].astype(compute_dtype)
    for i in range(num_layers):
        w = p[2 * i][...]
        b = p[2 * i + 1][...]
        acc = jnp.dot(h, w, preferred_element_type=jnp.float32) + b  # f32 accumulation
        if i < num_layers - 1:
            if activation == "relu":
                acc = jnp.maximum(acc, 0.0)
            elif activation == "gelu":
                # tanh-approx GELU -> EUP slot (VPU stays free); gelu(0)=0 keeps padding exact.
                acc = jax.nn.gelu(acc, approximate=_GELU_APPROX)
            # else: identity (matches Activation fallback)
            h = acc.astype(compute_dtype)  # narrow inter-layer h: halves spill traffic
        else:
            h = acc
    o_ref[...] = h.astype(o_ref.dtype)


# ----------------------------------------------------------------------------
# Parameter init / one-time preparation
# ----------------------------------------------------------------------------
def init_mlp_params(key, input_dim, hidden_dim, output_dim, num_layers):
    """Deterministic parameter init mirroring nn.Linear shapes (out, in)."""
    h = [hidden_dim] * (num_layers - 1)
    dims_in = [input_dim] + h
    dims_out = h + [output_dim]
    params = []
    for n_in, n_out in zip(dims_in, dims_out):
        key, kw, kb = jax.random.split(key, 3)
        bound = 1.0 / jnp.sqrt(jnp.float32(n_in))
        w = jax.random.uniform(kw, (n_out, n_in), jnp.float32, -bound, bound)
        b = jax.random.uniform(kb, (n_out,), jnp.float32, -bound, bound)
        params.append((w, b))
    return params


def prepare_mlp_params(params, compute_dtype=jnp.bfloat16):
    """Pre-transpose, zero-pad N to 128 lanes, cast weights to compute_dtype.

    Done ONCE.  The FIRST layer keeps K == true input_dim so the wrapper never
    has to pad/scatter x.  Padding is exact: padded weight cols/rows and biases
    are 0 and relu(0)=gelu(0)=0, so padded lanes stay 0 through every layer.
    """
    prepared = []
    for i, (w, b) in enumerate(params):
        n_out, n_in = w.shape
        kp = n_in if i == 0 else _round_up(n_in, _LANE)
        np_ = _round_up(n_out, _LANE)
        w_t = (jnp.zeros((kp, np_), compute_dtype)
               .at[:n_in, :n_out].set(w.T.astype(compute_dtype)))
        b_p = jnp.zeros((1, np_), jnp.float32).at[0, :n_out].set(b.astype(jnp.float32))
        prepared.append((w_t, b_p))
    output_dim = params[-1][0].shape[0]
    return prepared, output_dim, compute_dtype


# ----------------------------------------------------------------------------
# Forward wrapper
# ----------------------------------------------------------------------------
_SINGLE_BUFFER_WEIGHTS = True  # auto-falls back if pl.Buffered(1) is unsupported


def _vmem_policy():
    """(budget_bytes, vmem_limit_cap_bytes) per TPU generation."""
    kind = ""
    try:
        kind = jax.devices()[0].device_kind.lower()
    except Exception:
        pass
    if ("v5" in kind) or ("v6" in kind):
        return 80 * _MiB, 100 * _MiB       # 128 MiB physical VMEM per core
    return 36 * _MiB, 48 * _MiB            # v7x (64 MiB/TC) or unknown: conservative


def mlp_forward(x, prepared, activation: str = "relu"):
    """Fused MLP forward. x: (..., input_dim) -> (..., output_dim)."""
    global _SINGLE_BUFFER_WEIGHTS
    params, out_dim, compute_dtype = prepared
    num_layers = len(params)

    lead = x.shape[:-1]
    in_dim = x.shape[-1]
    M = 1
    for d in lead:
        M *= d
    x2 = x.reshape(M, in_dim)                 # free reshape; NO wrapper-side pad

    nlp = params[-1][0].shape[1]              # padded output feature dim
    max_np = max(w.shape[1] for w, _ in params)
    w_item = jnp.dtype(compute_dtype).itemsize
    # assume 2 buffers for weights in the estimate even if single-buffered (safety)
    weight_bytes = 2 * sum(int(w.size) * w_item + int(b.size) * 4 for w, b in params)

    budget, vmem_cap = _vmem_policy()
    # per-M-row bytes: double-buffered x/out tiles + f32 acc + narrow h intermediates
    per_row = 2 * (in_dim + nlp) * x2.dtype.itemsize + 8 * max_np

    # ---- tile size on the M axis -----------------------------------------
    if M <= _LANE:
        tm = _round_up(max(M, 1), 8)          # single small, fully in-bounds tile
    else:
        tm = min(2048, _round_up(M, _LANE))
        if M > 2 * _LANE:
            # ensure >= 2 grid steps so both v7x TensorCores get work
            tm = min(tm, _round_up(pl.cdiv(M, 2), _LANE))
        while tm > _LANE and weight_bytes + tm * per_row > budget:
            tm = max(_LANE, _round_up(tm // 2, _LANE))
    grid = (pl.cdiv(M, tm),)

    vmem_limit = int(min(vmem_cap,
                         max((weight_bytes + tm * per_row) * 3 // 2 + 2 * _MiB,
                             16 * _MiB)))

    kernel = functools.partial(_mlp_fused_kernel, num_layers=num_layers,
                               activation=activation, compute_dtype=compute_dtype)

    flat_inputs = [x2]
    for w, b in params:
        flat_inputs.append(w)
        flat_inputs.append(b)

    def build(single_buffer_weights: bool):
        in_specs = [pl.BlockSpec((tm, in_dim), lambda i: (i, 0))]
        for w, b in params:
            for arr in (w, b):
                if single_buffer_weights:
                    # block index never changes -> one resident buffer, no re-DMA
                    spec = pl.BlockSpec(arr.shape, lambda i: (0, 0),
                                        pipeline_mode=pl.Buffered(1))
                else:
                    spec = pl.BlockSpec(arr.shape, lambda i: (0, 0))
                in_specs.append(spec)
        return pl.pallas_call(
            kernel,
            out_shape=jax.ShapeDtypeStruct((M, nlp), x.dtype),
            grid_spec=pl.GridSpec(
                grid=grid,
                in_specs=in_specs,
                out_specs=pl.BlockSpec((tm, nlp), lambda i: (i, 0)),
            ),
            compiler_params=pltpu.CompilerParams(
                dimension_semantics=("parallel",),
                vmem_limit_bytes=vmem_limit,
            ),
        )

    out_p = None
    if _SINGLE_BUFFER_WEIGHTS:
        try:
            out_p = build(True)(*flat_inputs)
        except Exception:
            _SINGLE_BUFFER_WEIGHTS = False    # Buffered(1) unsupported -> default pipelining
    if out_p is None:
        out_p = build(False)(*flat_inputs)

    out = out_p if nlp == out_dim else out_p[:, :out_dim]
    return out.reshape(lead + (out_dim,))


# ----------------------------------------------------------------------------
if __name__ == "__main__":
    batch, seq = 2, 8
    input_dim, hidden_dim, output_dim, num_layers = 16, 32, 4, 3

    key = jax.random.PRNGKey(0)
    key, kx = jax.random.split(key)
    x = jax.random.normal(kx, (batch, seq, input_dim), jnp.float32)
    params = init_mlp_params(key, input_dim, hidden_dim, output_dim, num_layers)

    # ---- bf16 fast path (production config) ------------------------------
    prepared_bf16 = prepare_mlp_params(params, compute_dtype=jnp.bfloat16)
    out = jax.block_until_ready(mlp_forward(x, prepared_bf16, activation="relu"))

    # bf16-matched reference (same cast points as the kernel)
    ref = x.reshape(-1, input_dim).astype(jnp.bfloat16)
    for i, (w, b) in enumerate(params):
        acc = jnp.dot(ref, w.T.astype(jnp.bfloat16),
                      preferred_element_type=jnp.float32) + b
        if i < num_layers - 1:
            acc = jnp.maximum(acc, 0.0)
            ref = acc.astype(jnp.bfloat16)
        else:
            ref = acc
    ref = ref.reshape(batch, seq, output_dim).astype(out.dtype)
    assert out.shape == (batch, seq, output_dim)
    assert jnp.allclose(out, ref, atol=1e-2, rtol=1e-2)

    # ---- float32 validation path (tight parity with the module's math) ----
    prepared_f32 = prepare_mlp_params(params, compute_dtype=jnp.float32)
    out32 = jax.block_until_ready(mlp_forward(x, prepared_f32, activation="relu"))
    ref32 = x.reshape(-1, input_dim)
    for i, (w, b) in enumerate(params):
        ref32 = ref32 @ w.T + b
        if i < num_layers - 1:
            ref32 = jnp.maximum(ref32, 0.0)
    ref32 = ref32.reshape(batch, seq, output_dim)
    assert jnp.allclose(out32, ref32, atol=1e-5, rtol=1e-5)

    print("KERNEL_OK")
</pallas_src>

<mosaic_0001>
module attributes {stable_mosaic.version = 11 : i64} {
  func.func @_mlp_fused_kernel(%arg0: i32, %arg1: memref<16x16xf32, #tpu.memory_space<vmem>>, %arg2: memref<16x128xbf16, #tpu.memory_space<vmem>>, %arg3: memref<1x128xf32, #tpu.memory_space<vmem>>, %arg4: memref<128x128xbf16, #tpu.memory_space<vmem>>, %arg5: memref<1x128xf32, #tpu.memory_space<vmem>>, %arg6: memref<128x128xbf16, #tpu.memory_space<vmem>>, %arg7: memref<1x128xf32, #tpu.memory_space<vmem>>, %arg8: memref<16x128xf32, #tpu.memory_space<vmem>>) attributes {dimension_semantics = [#tpu.dimension_semantics<parallel>], iteration_bounds = array<i64: 1>, scalar_prefetch = 0 : i64, scratch_operands = 0 : i64, tpu.core_type = #tpu.core_type<tc>, window_params = [{transform_indices = @transform_0, window_bounds = array<i64: 16, 16>}, {pipeline_mode = #tpu.pipeline_mode<synchronous>, transform_indices = @transform_1, window_bounds = array<i64: 16, 128>}, {pipeline_mode = #tpu.pipeline_mode<synchronous>, transform_indices = @transform_2, window_bounds = array<i64: 1, 128>}, {pipeline_mode = #tpu.pipeline_mode<synchronous>, transform_indices = @transform_3, window_bounds = array<i64: 128, 128>}, {pipeline_mode = #tpu.pipeline_mode<synchronous>, transform_indices = @transform_4, window_bounds = array<i64: 1, 128>}, {pipeline_mode = #tpu.pipeline_mode<synchronous>, transform_indices = @transform_5, window_bounds = array<i64: 128, 128>}, {pipeline_mode = #tpu.pipeline_mode<synchronous>, transform_indices = @transform_6, window_bounds = array<i64: 1, 128>}, {transform_indices = @transform_7, window_bounds = array<i64: 16, 128>}]} {
    %c0 = arith.constant 0 : index
    %c0_0 = arith.constant 0 : index
    %0 = vector.load %arg1[%c0, %c0_0] : memref<16x16xf32, #tpu.memory_space<vmem>>, vector<16x16xf32>
    %1 = arith.truncf %0 : vector<16x16xf32> to vector<16x16xbf16>
    %c0_1 = arith.constant 0 : index
    %c0_2 = arith.constant 0 : index
    %2 = vector.load %arg2[%c0_1, %c0_2] : memref<16x128xbf16, #tpu.memory_space<vmem>>, vector<16x128xbf16>
    %c0_3 = arith.constant 0 : index
    %c0_4 = arith.constant 0 : index
    %3 = vector.load %arg3[%c0_3, %c0_4] : memref<1x128xf32, #tpu.memory_space<vmem>>, vector<1x128xf32>
    %cst = arith.constant dense<0.000000e+00> : vector<16x128xf32>
    %4 = tpu.matmul %1, %2, %cst {dimension_numbers = #tpu.dot_dimension_numbers<[1], [0], [0], [1], [0, 0, 1, 1], [], []>} : vector<16x16xbf16>, vector<16x128xbf16>, vector<16x128xf32> -> vector<16x128xf32>
    %5 = vector.broadcast %3 : vector<1x128xf32> to vector<16x128xf32>
    %6 = arith.addf %4, %5 : vector<16x128xf32>
    %cst_5 = arith.constant 0.000000e+00 : f32
    %7 = vector.broadcast %cst_5 : f32 to vector<16x128xf32>
    %8 = arith.maximumf %6, %7 : vector<16x128xf32>
    %9 = arith.truncf %8 : vector<16x128xf32> to vector<16x128xbf16>
    %c0_6 = arith.constant 0 : index
    %c0_7 = arith.constant 0 : index
    %10 = vector.load %arg4[%c0_6, %c0_7] : memref<128x128xbf16, #tpu.memory_space<vmem>>, vector<128x128xbf16>
    %c0_8 = arith.constant 0 : index
    %c0_9 = arith.constant 0 : index
    %11 = vector.load %arg5[%c0_8, %c0_9] : memref<1x128xf32, #tpu.memory_space<vmem>>, vector<1x128xf32>
    %cst_10 = arith.constant dense<0.000000e+00> : vector<16x128xf32>
    %12 = tpu.matmul %9, %10, %cst_10 {dimension_numbers = #tpu.dot_dimension_numbers<[1], [0], [0], [1], [0, 0, 1, 1], [], []>} : vector<16x128xbf16>, vector<128x128xbf16>, vector<16x128xf32> -> vector<16x128xf32>
    %13 = vector.broadcast %11 : vector<1x128xf32> to vector<16x128xf32>
    %14 = arith.addf %12, %13 : vector<16x128xf32>
    %cst_11 = arith.constant 0.000000e+00 : f32
    %15 = vector.broadcast %cst_11 : f32 to vector<16x128xf32>
    %16 = arith.maximumf %14, %15 : vector<16x128xf32>
    %17 = arith.truncf %16 : vector<16x128xf32> to vector<16x128xbf16>
    %c0_12 = arith.constant 0 : index
    %c0_13 = arith.constant 0 : index
    %18 = vector.load %arg6[%c0_12, %c0_13] : memref<128x128xbf16, #tpu.memory_space<vmem>>, vector<128x128xbf16>
    %c0_14 = arith.constant 0 : index
    %c0_15 = arith.constant 0 : index
    %19 = vector.load %arg7[%c0_14, %c0_15] : memref<1x128xf32, #tpu.memory_space<vmem>>, vector<1x128xf32>
    %cst_16 = arith.constant dense<0.000000e+00> : vector<16x128xf32>
    %20 = tpu.matmul %17, %18, %cst_16 {dimension_numbers = #tpu.dot_dimension_numbers<[1], [0], [0], [1], [0, 0, 1, 1], [], []>} : vector<16x128xbf16>, vector<128x128xbf16>, vector<16x128xf32> -> vector<16x128xf32>
    %21 = vector.broadcast %19 : vector<1x128xf32> to vector<16x128xf32>
    %22 = arith.addf %20, %21 : vector<16x128xf32>
    %c0_17 = arith.constant 0 : index
    %c0_18 = arith.constant 0 : index
    %23 = vector.load %arg8[%c0_17, %c0_18] : memref<16x128xf32, #tpu.memory_space<vmem>>, vector<16x128xf32>
    tpu.vector_store %arg8[%c0_17, %c0_18], %22 {strides = array<i32>} : memref<16x128xf32, #tpu.memory_space<vmem>>, vector<16x128xf32>,
    return
  }
  func.func @transform_0(%arg0: i32) -> (i32, i32) {
    %c0_i32 = arith.constant 0 : i32
    %c0_i32_0 = arith.constant 0 : i32
    return %arg0, %c0_i32 : i32, i32
  }
  func.func @transform_1(%arg0: i32) -> (i32, i32) {
    %c0_i32 = arith.constant 0 : i32
    %c0_i32_0 = arith.constant 0 : i32
    %c0_i32_1 = arith.constant 0 : i32
    return %c0_i32, %c0_i32_0 : i32, i32
  }
  func.func @transform_2(%arg0: i32) -> (i32, i32) {
    %c0_i32 = arith.constant 0 : i32
    %c0_i32_0 = arith.constant 0 : i32
    %c0_i32_1 = arith.constant 0 : i32
    return %c0_i32, %c0_i32_0 : i32, i32
  }
  func.func @transform_3(%arg0: i32) -> (i32, i32) {
    %c0_i32 = arith.constant 0 : i32
    %c0_i32_0 = arith.constant 0 : i32
    %c0_i32_1 = arith.constant 0 : i32
    return %c0_i32, %c0_i32_0 : i32, i32
  }
  func.func @transform_4(%arg0: i32) -> (i32, i32) {
    %c0_i32 = arith.constant 0 : i32
    %c0_i32_0 = arith.constant 0 : i32
    %c0_i32_1 = arith.constant 0 : i32
    return %c0_i32, %c0_i32_0 : i32, i32
  }
  func.func @transform_5(%arg0: i32) -> (i32, i32) {
    %c0_i32 = arith.constant 0 : i32
    %c0_i32_0 = arith.constant 0 : i32
    %c0_i32_1 = arith.constant 0 : i32
    return %c0_i32, %c0_i32_0 : i32, i32
  }
  func.func @transform_6(%arg0: i32) -> (i32, i32) {
    %c0_i32 = arith.constant 0 : i32
    %c0_i32_0 = arith.constant 0 : i32
    %c0_i32_1 = arith.constant 0 : i32
    return %c0_i32, %c0_i32_0 : i32, i32
  }
  func.func @transform_7(%arg0: i32) -> (i32, i32) {
    %c0_i32 = arith.constant 0 : i32
    %c0_i32_0 = arith.constant 0 : i32
    return %arg0, %c0_i32 : i32, i32
  }
}

module attributes {stable_mosaic.version = 11 : i64} {
  func.func @_mlp_fused_kernel(%arg0: i32, %arg1: memref<16x16xf32, #tpu.memory_space<vmem>>, %arg2: memref<16x128xbf16, #tpu.memory_space<vmem>>, %arg3: memref<1x128xf32, #tpu.memory_space<vmem>>, %arg4: memref<128x128xbf16, #tpu.memory_space<vmem>>, %arg5: memref<1x128xf32, #tpu.memory_space<vmem>>, %arg6: memref<128x128xbf16, #tpu.memory_space<vmem>>, %arg7: memref<1x128xf32, #tpu.memory_space<vmem>>, %arg8: memref<16x128xf32, #tpu.memory_space<vmem>>) attributes {dimension_semantics = [#tpu.dimension_semantics<parallel>], iteration_bounds = array<i64: 1>, scalar_prefetch = 0 : i64, scratch_operands = 0 : i64, tpu.core_type = #tpu.core_type<tc>, window_params = [{transform_indices = @transform_0, window_bounds = array<i64: 16, 16>}, {pipeline_mode = #tpu.pipeline_mode<synchronous>, transform_indices = @transform_1, window_bounds = array<i64: 16, 128>}, {pipeline_mode = #tpu.pipeline_mode<synchronous>, transform_indices = @transform_2, window_bounds = array<i64: 1, 128>}, {pipeline_mode = #tpu.pipeline_mode<synchronous>, transform_indices = @transform_3, window_bounds = array<i64: 128, 128>}, {pipeline_mode = #tpu.pipeline_mode<synchronous>, transform_indices = @transform_4, window_bounds = array<i64: 1, 128>}, {pipeline_mode = #tpu.pipeline_mode<synchronous>, transform_indices = @transform_5, window_bounds = array<i64: 128, 128>}, {pipeline_mode = #tpu.pipeline_mode<synchronous>, transform_indices = @transform_6, window_bounds = array<i64: 1, 128>}, {transform_indices = @transform_7, window_bounds = array<i64: 16, 128>}]} {
    %c0 = arith.constant 0 : index
    %c0_0 = arith.constant 0 : index
    %0 = vector.load %arg1[%c0, %c0_0] : memref<16x16xf32, #tpu.memory_space<vmem>>, vector<16x16xf32>
    %1 = arith.truncf %0 : vector<16x16xf32> to vector<16x16xbf16>
    %c0_1 = arith.constant 0 : index
    %c0_2 = arith.constant 0 : index
    %2 = vector.load %arg2[%c0_1, %c0_2] : memref<16x128xbf16, #tpu.memory_space<vmem>>, vector<16x128xbf16>
    %c0_3 = arith.constant 0 : index
    %c0_4 = arith.constant 0 : index
    %3 = vector.load %arg3[%c0_3, %c0_4] : memref<1x128xf32, #tpu.memory_space<vmem>>, vector<1x128xf32>
    %cst = arith.constant dense<0.000000e+00> : vector<16x128xf32>
    %4 = tpu.matmul %1, %2, %cst {dimension_numbers = #tpu.dot_dimension_numbers<[1], [0], [0], [1], [0, 0, 1, 1], [], []>} : vector<16x16xbf16>, vector<16x128xbf16>, vector<16x128xf32> -> vector<16x128xf32>
    %5 = vector.broadcast %3 : vector<1x128xf32> to vector<16x128xf32>
    %6 = arith.addf %4, %5 : vector<16x128xf32>
    %cst_5 = arith.constant 0.000000e+00 : f32
    %7 = vector.broadcast %cst_5 : f32 to vector<16x128xf32>
    %8 = arith.maximumf %6, %7 : vector<16x128xf32>
    %9 = arith.truncf %8 : vector<16x128xf32> to vector<16x128xbf16>
    %c0_6 = arith.constant 0 : index
    %c0_7 = arith.constant 0 : index
    %10 = vector.load %arg4[%c0_6, %c0_7] : memref<128x128xbf16, #tpu.memory_space<vmem>>, vector<128x128xbf16>
    %c0_8 = arith.constant 0 : index
    %c0_9 = arith.constant 0 : index
    %11 = vector.load %arg5[%c0_8, %c0_9] : memref<1x128xf32, #tpu.memory_space<vmem>>, vector<1x128xf32>
    %cst_10 = arith.constant dense<0.000000e+00> : vector<16x128xf32>
    %12 = tpu.matmul %9, %10, %cst_10 {dimension_numbers = #tpu.dot_dimension_numbers<[1], [0], [0], [1], [0, 0, 1, 1], [], []>} : vector<16x128xbf16>, vector<128x128xbf16>, vector<16x128xf32> -> vector<16x128xf32>
    %13 = vector.broadcast %11 : vector<1x128xf32> to vector<16x128xf32>
    %14 = arith.addf %12, %13 : vector<16x128xf32>
    %cst_11 = arith.constant 0.000000e+00 : f32
    %15 = vector.broadcast %cst_11 : f32 to vector<16x128xf32>
    %16 = arith.maximumf %14, %15 : vector<16x128xf32>
    %17 = arith.truncf %16 : vector<16x128xf32> to vector<16x128xbf16>
    %c0_12 = arith.constant 0 : index
    %c0_13 = arith.constant 0 : index
    %18 = vector.load %arg6[%c0_12, %c0_13] : memref<128x128xbf16, #tpu.memory_space<vmem>>, vector<128x128xbf16>
    %c0_14 = arith.constant 0 : index
    %c0_15 = arith.constant 0 : index
    %19 = vector.load %arg7[%c0_14, %c0_15] : memref<1x128xf32, #tpu.memory_space<vmem>>, vector<1x128xf32>
    %cst_16 = arith.constant dense<0.000000e+00> : vector<16x128xf32>
    %20 = tpu.matmul %17, %18, %cst_16 {dimension_numbers = #tpu.dot_dimension_numbers<[1], [0], [0], [1], [0, 0, 1, 1], [], []>} : vector<16x128xbf16>, vector<128x128xbf16>, vector<16x128xf32> -> vector<16x128xf32>
    %21 = vector.broadcast %19 : vector<1x128xf32> to vector<16x128xf32>
    %22 = arith.addf %20, %21 : vector<16x128xf32>
    %c0_17 = arith.constant 0 : index
    %c0_18 = arith.constant 0 : index
    %23 = vector.load %arg8[%c0_17, %c0_18] : memref<16x128xf32, #tpu.memory_space<vmem>>, vector<16x128xf32>
    tpu.vector_store %arg8[%c0_17, %c0_18], %22 {strides = array<i32>} : memref<16x128xf32, #tpu.memory_space<vmem>>, vector<16x128xf32>,
    return
  }
  func.func @transform_0(%arg0: i32) -> (i32, i32) {
    %c0_i32 = arith.constant 0 : i32
    %c0_i32_0 = arith.constant 0 : i32
    return %arg0, %c0_i32 : i32, i32
  }
  func.func @transform_1(%arg0: i32) -> (i32, i32) {
    %c0_i32 = arith.constant 0 : i32
    %c0_i32_0 = arith.constant 0 : i32
    %c0_i32_1 = arith.constant 0 : i32
    return %c0_i32, %c0_i32_0 : i32, i32
  }
  func.func @transform_2(%arg0: i32) -> (i32, i32) {
    %c0_i32 = arith.constant 0 : i32
    %c0_i32_0 = arith.constant 0 : i32
    %c0_i32_1 = arith.constant 0 : i32
    return %c0_i32, %c0_i32_0 : i32, i32
  }
  func.func @transform_3(%arg0: i32) -> (i32, i32) {
    %c0_i32 = arith.constant 0 : i32
    %c0_i32_0 = arith.constant 0 : i32
    %c0_i32_1 = arith.constant 0 : i32
    return %c0_i32, %c0_i32_0 : i32, i32
  }
  func.func @transform_4(%arg0: i32) -> (i32, i32) {
    %c0_i32 = arith.constant 0 : i32
    %c0_i32_0 = arith.constant 0 : i32
    %c0_i32_1 = arith.constant 0 : i32
    return %c0_i32, %c0_i32_0 : i32, i32
  }
  func.func @transform_5(%arg0: i32) -> (i32, i32) {
    %c0_i32 = arith.constant 0 : i32
    %c0_i32_0 = arith.constant 0 : i32
    %c0_i32_1 = arith.constant 0 : i32
    return %c0_i32, %c0_i32_0 : i32, i32
  }
  func.func @transform_6(%arg0: i32) -> (i32, i32) {
    %c0_i32 = arith.constant 0 : i32
    %c0_i32_0 = arith.constant 0 : i32
    %c0_i32_1 = arith.constant 0 : i32
    return %c0_i32, %c0_i32_0 : i32, i32
  }
  func.func @transform_7(%arg0: i32) -> (i32, i32) {
    %c0_i32 = arith.constant 0 : i32
    %c0_i32_0 = arith.constant 0 : i32
    return %arg0, %c0_i32 : i32, i32
  }
}

</mosaic_0001>

<bundles_post_ra>
// kernel: tpu_custom_call.1
= control target key start
LH: loop header
LB: loop body
LE: loop exit
PB: predicated region body
PF: predicated region fallthrough
CT: control target
= control target key end

     0   :  { %12 = vsyncpa [#allocation3], 0  ;;  %s622_s0 = inlined_call_operand.hbm [shape: f32[16,16], index: 0, kind: input, shape index: {}]   ;;  %s623_s1 = inlined_call_operand.hbm [shape: bf16[16,128], index: 1, kind: input, shape index: {}]   ;;  %s624_s2 = inlined_call_operand.vmem [shape: f32[1,128], index: 2, kind: input, shape index: {}]   ;;  %s625_s3 = inlined_call_operand.hbm [shape: bf16[128,128], index: 3, kind: input, shape index: {}]   ;;  %s626_s4 = inlined_call_operand.vmem [shape: f32[1,128], index: 4, kind: input, shape index: {}]   ;;  %s627_s5 = inlined_call_operand.hbm [shape: bf16[128,128], index: 5, kind: input, shape index: {}]   ;;  %s628_s6 = inlined_call_operand.vmem [shape: f32[1,128], index: 6, kind: input, shape index: {}]   ;;  %s629_s7 = inlined_call_operand.hbm [shape: f32[16,128], index: 7, kind: output, shape index: {}]  }
   0x1   :  { %13 = vsyncpa [#allocation6], 0 }
   0x2   :  { %14 = vsyncpa [#allocation9], 0  ;;  %s33_s26 = sshll.u32 %s623_s1, 4  ;;  %s34_s26 = int_to_ptr.hbm [resolvable:$true] %s33_s26 }
   0x3   :  { %15 = vsyncpa [#allocation4], 0  ;;  %s543_s27 = smov [#allocation5]   ;;  %s20_s8 = sshll.u32 %s622_s0, 4  ;;  %s21_s8 = int_to_ptr.hbm [resolvable:$true] %s20_s8 }
   0x4   :  { %s35_s28 = sshll.u32 %s543_s27, 4  ;;  %s544_s9 = smov 64   ;;  %s36_s28 = int_to_ptr.vmem [resolvable:$true] %s35_s28 }
   0x5   :  { %s545_s10 = smov 4   ;;  %s546_s11 = smov [#allocation2]  }
   0x6   :  { %41 = dma.hbm_to_vmem [thread:$0]  %s34_s26, 128, %s36_s28, [#allocation6], %s544_s9, %s544_s9, %s545_s10  }
   0x7   :  { %s22_s12 = sshll.u32 %s546_s11, 4  ;;  %s547_s13 = smov 128   ;;  %s23_s12 = int_to_ptr.vmem [resolvable:$true] %s22_s12 }
   0x8   :  { %s548_s14 = smov 8   ;;  %s48_s16 = sshll.u32 %s625_s3, 4  ;;  %s49_s16 = int_to_ptr.hbm [resolvable:$true] %s48_s16 }
   0x9   :  { %28 = dma.hbm_to_vmem [thread:$0]  %s21_s8, 256, %s23_s12, [#allocation3], %s547_s13, %s547_s13, %s548_s14  }
   0xa   :  { %s549_s17 = smov [#allocation7]   ;;  %s63_s20 = sshll.u32 %s627_s5, 4  ;;  %s64_s20 = int_to_ptr.hbm [resolvable:$true] %s63_s20 }
   0xb   :  { %s50_s0 = sshll.u32 %s549_s17, 4  ;;  %s550_s21 = smov [#allocation8]   ;;  %s51_s0 = int_to_ptr.vmem [resolvable:$true] %s50_s0 }
   0xc   :  { %56 = dma.hbm_to_vmem [thread:$0]  %s49_s16, 1024, %s51_s0, [#allocation6], %s544_s9, %s544_s9, %s545_s10  }
   0xd   :  { %s65_s22 = sshll.u32 %s550_s21, 4  ;;  %s66_s22 = int_to_ptr.vmem [resolvable:$true] %s65_s22 }
   0xe   :  { %71 = dma.hbm_to_vmem [thread:$0]  %s64_s20, 1024, %s66_s22, [#allocation9], %s544_s9, %s544_s9, %s545_s10  }
   0xf   :  { %535 = dma.done.wait [#allocation3], 256  }
  0x10   :  { %536 = vsyncadd [#allocation3], 4294967040 }
  0x11   :  { %537 = dma.done.wait [#allocation6], 1152  }
  0x12   :  { %538 = vsyncadd [#allocation6], 4294966144 }
  0x13   :  { %539 = dma.done.wait [#allocation9], 1024  }
  0x14   :  { %540 = vsyncadd [#allocation9], 4294966272  ;;  %v386_v0 = vld [vmem:[#allocation5] sm:$0xff]  ;;  %v91_v1 = vld [vmem:[#allocation2] sm:$0xff]  ;;  %vm106_vm0 = vcmask 130048   ;;  %s551_s26 = smov [#allocation10]  }
  0x15   :  { %v92_v2 = vld [vmem:[#allocation2 + $0x8] sm:$0xff]  ;;  %v394_v4 = vld [vmem:[#allocation7 + $0x38] sm:$0xff]  ;;  %117 = vmatpush.bf16.msra.mxu0 %v386_v0  ;;  %v392_v6 = vld [vmem:[#allocation7 + $0x28] sm:$0xff]  ;;  %s300_s27 = sshll.u32 %s551_s26, 4  ;;  %s301_s27 = int_to_ptr.vmem [resolvable:$true] %s300_s27 }
  0x16   :  { %v93_v3 = vpack.c.bf16 %v92_v2, %v91_v1  ;;  %195 = vmatpush.bf16.msra.mxu1 %v394_v4  ;;  %v393_v5 = vld [vmem:[#allocation7 + $0x30] sm:$0xff]  ;;  %v391_v7 = vld [vmem:[#allocation7 + $0x20] sm:$0xff]  ;;  %v390_v8 = vld [vmem:[#allocation7 + $0x18] sm:$0xff] }
  0x17   :  { %v389_v9 = vld [vmem:[#allocation7 + $0x10] sm:$0xff]  ;;  %v388_v10 = vld [vmem:[#allocation7 + $0x8] sm:$0xff]  ;;  %v387_v11 = vld [vmem:[#allocation7] sm:$0xff] }
  0x18   :  { %321 = vmatmul.msk.bf16.vlgmr.msra.gmra.mxu0 %vm106_vm0, %v93_v3  ;;  %v402_v12 = vld [vmem:[#allocation8 + $0x38] sm:$0xff]  ;;  %v401_v13 = vld [vmem:[#allocation8 + $0x30] sm:$0xff]  ;;  %v400_v14 = vld [vmem:[#allocation8 + $0x28] sm:$0xff] }
  0x19   :  { %280 = vmatpush.bf16.msra.mxu2 %v402_v12  ;;  %v399_v15 = vld [vmem:[#allocation8 + $0x20] sm:$0xff]  ;;  %v412_v17 = vld [vmem:[%s624_s2] ss:$0 sm:$0xff]  ;;  %v398_v24 = vld [vmem:[#allocation8 + $0x18] sm:$0xff] }
  0x1a   :  { %196 = vmatpush.bf16.msra.mxu1 %v393_v5  ;;  %v397_v25 = vld [vmem:[#allocation8 + $0x10] sm:$0xff]  ;;  %v396_v26 = vld [vmem:[#allocation8 + $0x8] sm:$0xff]  ;;  %v395_v27 = vld [vmem:[#allocation8] sm:$0xff] }
  0x1b   :  { %v413_v29 = vld [vmem:[%s626_s4] ss:$0 sm:$0xff]  ;;  %s302_s4 = sshll.u32 %s629_s7, 4  ;;  %s303_s4 = int_to_ptr.hbm [resolvable:$true] %s302_s4 }
  0x1c   :  { %v414_v36 = vld [vmem:[%s628_s6] ss:$0 sm:$0xff] }
  0x1d   :  { %281 = vmatpush.bf16.msra.mxu2 %v401_v13 }
  0x1e   :  { %197 = vmatpush.bf16.msra.mxu1 %v392_v6 }
  0x21   :  { %282 = vmatpush.bf16.msra.mxu2 %v400_v14 }
  0x22   :  { %198 = vmatpush.bf16.msra.mxu1 %v391_v7 }
  0x25   :  { %283 = vmatpush.bf16.msra.mxu2 %v399_v15 }
  0x26   :  { %199 = vmatpush.bf16.msra.mxu1 %v390_v8 }
  0x29   :  { %284 = vmatpush.bf16.msra.mxu2 %v398_v24 }
  0x2a   :  { %200 = vmatpush.bf16.msra.mxu1 %v389_v9 }
  0x2d   :  { %285 = vmatpush.bf16.msra.mxu2 %v397_v25 }
  0x2e   :  { %201 = vmatpush.bf16.msra.mxu1 %v388_v10 }
  0x31   :  { %286 = vmatpush.bf16.msra.mxu2 %v396_v26 }
  0x32   :  { %202 = vmatpush.bf16.msra.mxu1 %v387_v11 }
  0x35   :  { %287 = vmatpush.bf16.msra.mxu2 %v395_v27 }
  0x95   :  { %v119_v16 = vpop.f32.mrf.mxu0 }
  0x96   :  { %v120_v18 = vadd.f32 %v412_v17, %v119_v16 }
  0x98   :  { %v124_v21 = vmax.f32 %v120_v18, 0.0 }
  0x9d   :  { %v121_v19 = vpop.f32.mrf.mxu0 }
  0x9e   :  { %v122_v20 = vadd.f32 %v412_v17, %v121_v19 }
  0xa0   :  { %v125_v22 = vmax.f32 %v122_v20, 0.0 }
  0xa2   :  { %v126_v23 = vpack.c.bf16 %v125_v22, %v124_v21 }
  0xa4   :  { %203 = vmatmul.bf16.vlgmr.msra.gmra.mxu1 %v126_v23 }
 0x121   :  { %v204_v28 = vpop.f32.mrf.mxu1 }
 0x122   :  { %v205_v30 = vadd.f32 %v413_v29, %v204_v28 }
 0x124   :  { %v209_v33 = vmax.f32 %v205_v30, 0.0 }
 0x129   :  { %v206_v31 = vpop.f32.mrf.mxu1 }
 0x12a   :  { %v207_v32 = vadd.f32 %v413_v29, %v206_v31 }
 0x12c   :  { %v210_v34 = vmax.f32 %v207_v32, 0.0 }
 0x12e   :  { %v211_v35 = vpack.c.bf16 %v210_v34, %v209_v33 }
 0x130   :  { %288 = vmatmul.bf16.vlgmr.msra.gmra.mxu2 %v211_v35 }
 0x1b3   :  { %v289_v37 = vpop.f32.mrf.mxu2 }
 0x1b4   :  { %v290_v38 = vadd.f32 %v414_v36, %v289_v37 }
 0x1b6   :  { %294 = vst [vmem:[#allocation10] sm:$0xff] %v290_v38 }
 0x1bb   :  { %v291_v39 = vpop.f32.mrf.mxu2 }
 0x1bc   :  { %v292_v40 = vadd.f32 %v414_v36, %v291_v39 }
 0x1be   :  { %295 = vst [vmem:[#allocation10 + $0x8] sm:$0xff] %v292_v40 }
 0x1bf   :  { %308 = dma.vmem_to_hbm [thread:$0]  %s301_s27, 256, %s303_s4, [#allocation4], %s547_s13, %s547_s13, %s548_s14  }
 0x1c0   :  { %541 = dma.done.wait [#allocation4], 256  }
 0x1c1   :  { %542 = vsyncadd [#allocation4], 4294967040 }
 0x1c2   :  { %313 = vsyncpa [#allocation3], 1 }
 0x1c3   :  { %314 = vsyncpa [#allocation6], 1 }
 0x1c4   :  { %315 = vsyncpa [#allocation9], 1 }
 0x1c5   :  { %316 = vsyncpa [#allocation4], 1 }

// kernel: tpu_custom_call.1
= control target key start
LH: loop header
LB: loop body
LE: loop exit
PB: predicated region body
PF: predicated region fallthrough
CT: control target
= control target key end

     0   :  { %12 = vsyncpa [#allocation3], 0  ;;  %s622_s0 = inlined_call_operand.hbm [shape: f32[16,16], index: 0, kind: input, shape index: {}]   ;;  %s623_s1 = inlined_call_operand.hbm [shape: bf16[16,128], index: 1, kind: input, shape index: {}]   ;;  %s624_s2 = inlined_call_operand.vmem [shape: f32[1,128], index: 2, kind: input, shape index: {}]   ;;  %s625_s3 = inlined_call_operand.hbm [shape: bf16[128,128], index: 3, kind: input, shape index: {}]   ;;  %s626_s4 = inlined_call_operand.vmem [shape: f32[1,128], index: 4, kind: input, shape index: {}]   ;;  %s627_s5 = inlined_call_operand.hbm [shape: bf16[128,128], index: 5, kind: input, shape index: {}]   ;;  %s628_s6 = inlined_call_operand.vmem [shape: f32[1,128], index: 6, kind: input, shape index: {}]   ;;  %s629_s7 = inlined_call_operand.hbm [shape: f32[16,128], index: 7, kind: output, shape index: {}]  }
   0x1   :  { %13 = vsyncpa [#allocation6], 0 }
   0x2   :  { %14 = vsyncpa [#allocation9], 0  ;;  %s33_s26 = sshll.u32 %s623_s1, 4  ;;  %s34_s26 = int_to_ptr.hbm [resolvable:$true] %s33_s26 }
   0x3   :  { %15 = vsyncpa [#allocation4], 0  ;;  %s543_s27 = smov [#allocation5]   ;;  %s20_s8 = sshll.u32 %s622_s0, 4  ;;  %s21_s8 = int_to_ptr.hbm [resolvable:$true] %s20_s8 }
   0x4   :  { %s35_s28 = sshll.u32 %s543_s27, 4  ;;  %s544_s9 = smov 64   ;;  %s36_s28 = int_to_ptr.vmem [resolvable:$true] %s35_s28 }
   0x5   :  { %s545_s10 = smov 4   ;;  %s546_s11 = smov [#allocation2]  }
   0x6   :  { %41 = dma.hbm_to_vmem [thread:$0]  %s34_s26, 128, %s36_s28, [#allocation6], %s544_s9, %s544_s9, %s545_s10  }
   0x7   :  { %s22_s12 = sshll.u32 %s546_s11, 4  ;;  %s547_s13 = smov 128   ;;  %s23_s12 = int_to_ptr.vmem [resolvable:$true] %s22_s12 }
   0x8   :  { %s548_s14 = smov 8   ;;  %s48_s16 = sshll.u32 %s625_s3, 4  ;;  %s49_s16 = int_to_ptr.hbm [resolvable:$true] %s48_s16 }
   0x9   :  { %28 = dma.hbm_to_vmem [thread:$0]  %s21_s8, 256, %s23_s12, [#allocation3], %s547_s13, %s547_s13, %s548_s14  }
   0xa   :  { %s549_s17 = smov [#allocation7]   ;;  %s63_s20 = sshll.u32 %s627_s5, 4  ;;  %s64_s20 = int_to_ptr.hbm [resolvable:$true] %s63_s20 }
   0xb   :  { %s50_s0 = sshll.u32 %s549_s17, 4  ;;  %s550_s21 = smov [#allocation8]   ;;  %s51_s0 = int_to_ptr.vmem [resolvable:$true] %s50_s0 }
   0xc   :  { %56 = dma.hbm_to_vmem [thread:$0]  %s49_s16, 1024, %s51_s0, [#allocation6], %s544_s9, %s544_s9, %s545_s10  }
   0xd   :  { %s65_s22 = sshll.u32 %s550_s21, 4  ;;  %s66_s22 = int_to_ptr.vmem [resolvable:$true] %s65_s22 }
   0xe   :  { %71 = dma.hbm_to_vmem [thread:$0]  %s64_s20, 1024, %s66_s22, [#allocation9], %s544_s9, %s544_s9, %s545_s10  }
   0xf   :  { %535 = dma.done.wait [#allocation3], 256  }
  0x10   :  { %536 = vsyncadd [#allocation3], 4294967040 }
  0x11   :  { %537 = dma.done.wait [#allocation6], 1152  }
  0x12   :  { %538 = vsyncadd [#allocation6], 4294966144 }
  0x13   :  { %539 = dma.done.wait [#allocation9], 1024  }
  0x14   :  { %540 = vsyncadd [#allocation9], 4294966272  ;;  %v386_v0 = vld [vmem:[#allocation5] sm:$0xff]  ;;  %v91_v1 = vld [vmem:[#allocation2] sm:$0xff]  ;;  %vm106_vm0 = vcmask 130048   ;;  %s551_s26 = smov [#allocation10]  }
  0x15   :  { %v92_v2 = vld [vmem:[#allocation2 + $0x8] sm:$0xff]  ;;  %v394_v4 = vld [vmem:[#allocation7 + $0x38] sm:$0xff]  ;;  %117 = vmatpush.bf16.msra.mxu0 %v386_v0  ;;  %v392_v6 = vld [vmem:[#allocation7 + $0x28] sm:$0xff]  ;;  %s300_s27 = sshll.u32 %s551_s26, 4  ;;  %s301_s27 = int_to_ptr.vmem [resolvable:$true] %s300_s27 }
  0x16   :  { %v93_v3 = vpack.c.bf16 %v92_v2, %v91_v1  ;;  %195 = vmatpush.bf16.msra.mxu1 %v394_v4  ;;  %v393_v5 = vld [vmem:[#allocation7 + $0x30] sm:$0xff]  ;;  %v391_v7 = vld [vmem:[#allocation7 + $0x20] sm:$0xff]  ;;  %v390_v8 = vld [vmem:[#allocation7 + $0x18] sm:$0xff] }
  0x17   :  { %v389_v9 = vld [vmem:[#allocation7 + $0x10] sm:$0xff]  ;;  %v388_v10 = vld [vmem:[#allocation7 + $0x8] sm:$0xff]  ;;  %v387_v11 = vld [vmem:[#allocation7] sm:$0xff] }
  0x18   :  { %321 = vmatmul.msk.bf16.vlgmr.msra.gmra.mxu0 %vm106_vm0, %v93_v3  ;;  %v402_v12 = vld [vmem:[#allocation8 + $0x38] sm:$0xff]  ;;  %v401_v13 = vld [vmem:[#allocation8 + $0x30] sm:$0xff]  ;;  %v400_v14 = vld [vmem:[#allocation8 + $0x28] sm:$0xff] }
  0x19   :  { %280 = vmatpush.bf16.msra.mxu2 %v402_v12  ;;  %v399_v15 = vld [vmem:[#allocation8 + $0x20] sm:$0xff]  ;;  %v412_v17 = vld [vmem:[%s624_s2] ss:$0 sm:$0xff]  ;;  %v398_v24 = vld [vmem:[#allocation8 + $0x18] sm:$0xff] }
  0x1a   :  { %196 = vmatpush.bf16.msra.mxu1 %v393_v5  ;;  %v397_v25 = vld [vmem:[#allocation8 + $0x10] sm:$0xff]  ;;  %v396_v26 = vld [vmem:[#allocation8 + $0x8] sm:$0xff]  ;;  %v395_v27 = vld [vmem:[#allocation8] sm:$0xff] }
  0x1b   :  { %v413_v29 = vld [vmem:[%s626_s4] ss:$0 sm:$0xff]  ;;  %s302_s4 = sshll.u32 %s629_s7, 4  ;;  %s303_s4 = int_to_ptr.hbm [resolvable:$true] %s302_s4 }
  0x1c   :  { %v414_v36 = vld [vmem:[%s628_s6] ss:$0 sm:$0xff] }
  0x1d   :  { %281 = vmatpush.bf16.msra.mxu2 %v401_v13 }
  0x1e   :  { %197 = vmatpush.bf16.msra.mxu1 %v392_v6 }
  0x21   :  { %282 = vmatpush.bf16.msra.mxu2 %v400_v14 }
  0x22   :  { %198 = vmatpush.bf16.msra.mxu1 %v391_v7 }
  0x25   :  { %283 = vmatpush.bf16.msra.mxu2 %v399_v15 }
  0x26   :  { %199 = vmatpush.bf16.msra.mxu1 %v390_v8 }
  0x29   :  { %284 = vmatpush.bf16.msra.mxu2 %v398_v24 }
  0x2a   :  { %200 = vmatpush.bf16.msra.mxu1 %v389_v9 }
  0x2d   :  { %285 = vmatpush.bf16.msra.mxu2 %v397_v25 }
  0x2e   :  { %201 = vmatpush.bf16.msra.mxu1 %v388_v10 }
  0x31   :  { %286 = vmatpush.bf16.msra.mxu2 %v396_v26 }
  0x32   :  { %202 = vmatpush.bf16.msra.mxu1 %v387_v11 }
  0x35   :  { %287 = vmatpush.bf16.msra.mxu2 %v395_v27 }
  0x95   :  { %v119_v16 = vpop.f32.mrf.mxu0 }
  0x96   :  { %v120_v18 = vadd.f32 %v412_v17, %v119_v16 }
  0x98   :  { %v124_v21 = vmax.f32 %v120_v18, 0.0 }
  0x9d   :  { %v121_v19 = vpop.f32.mrf.mxu0 }
  0x9e   :  { %v122_v20 = vadd.f32 %v412_v17, %v121_v19 }
  0xa0   :  { %v125_v22 = vmax.f32 %v122_v20, 0.0 }
  0xa2   :  { %v126_v23 = vpack.c.bf16 %v125_v22, %v124_v21 }
  0xa4   :  { %203 = vmatmul.bf16.vlgmr.msra.gmra.mxu1 %v126_v23 }
 0x121   :  { %v204_v28 = vpop.f32.mrf.mxu1 }
 0x122   :  { %v205_v30 = vadd.f32 %v413_v29, %v204_v28 }
 0x124   :  { %v209_v33 = vmax.f32 %v205_v30, 0.0 }
 0x129   :  { %v206_v31 = vpop.f32.mrf.mxu1 }
 0x12a   :  { %v207_v32 = vadd.f32 %v413_v29, %v206_v31 }
 0x12c   :  { %v210_v34 = vmax.f32 %v207_v32, 0.0 }
 0x12e   :  { %v211_v35 = vpack.c.bf16 %v210_v34, %v209_v33 }
 0x130   :  { %288 = vmatmul.bf16.vlgmr.msra.gmra.mxu2 %v211_v35 }
 0x1b3   :  { %v289_v37 = vpop.f32.mrf.mxu2 }
 0x1b4   :  { %v290_v38 = vadd.f32 %v414_v36, %v289_v37 }
 0x1b6   :  { %294 = vst [vmem:[#allocation10] sm:$0xff] %v290_v38 }
 0x1bb   :  { %v291_v39 = vpop.f32.mrf.mxu2 }
 0x1bc   :  { %v292_v40 = vadd.f32 %v414_v36, %v291_v39 }
 0x1be   :  { %295 = vst [vmem:[#allocation10 + $0x8] sm:$0xff] %v292_v40 }
 0x1bf   :  { %308 = dma.vmem_to_hbm [thread:$0]  %s301_s27, 256, %s303_s4, [#allocation4], %s547_s13, %s547_s13, %s548_s14  }
 0x1c0   :  { %541 = dma.done.wait [#allocation4], 256  }
 0x1c1   :  { %542 = vsyncadd [#allocation4], 4294967040 }
 0x1c2   :  { %313 = vsyncpa [#allocation3], 1 }
 0x1c3   :  { %314 = vsyncpa [#allocation6], 1 }
 0x1c4   :  { %315 = vsyncpa [#allocation9], 1 }
 0x1c5   :  { %316 = vsyncpa [#allocation4], 1 }

</bundles_post_ra>
